<compile_context>
chip_gen: v6e
topology: v6e:2x2x1
jax: 0.10.0
libtpu: 0.0.40
codegen_flags: <defaults>
</compile_context>

<pallas_src>
import functools

import jax
import jax.numpy as jnp
from jax import lax
from jax.experimental import pallas as pl
from jax.experimental.pallas import tpu as pltpu


def _round_up(x, m):
    return ((x + m - 1) // m) * m


# ----------------------------------------------------------------------------
# Fused kernel: per-tile [2 x projection] -> cosine similarity -> SSE accumulate
# ----------------------------------------------------------------------------
def _make_kernel(true_batch):
    inv_batch = 1.0 / float(true_batch)

    def kernel(xa_ref, xb_ref, w_ref, lab_ref, loss_ref, sse_ref):
        i = pl.program_id(0)

        @pl.when(i == 0)
        def _():
            sse_ref[0, 0] = jnp.float32(0.0)

        w = w_ref[...]                                      # (S*H, D) bf16, resident
        # Two MXU passes per tile, f32 accumulation (bf16-native MXU path).
        a = jnp.dot(xa_ref[...], w, preferred_element_type=jnp.float32)  # (TB, D)
        b = jnp.dot(xb_ref[...], w, preferred_element_type=jnp.float32)  # (TB, D)
        lab = lab_ref[...]                                  # (TB, 1) f32

        dot_ab = jnp.sum(a * b, axis=-1, keepdims=True)     # (TB, 1)
        na2 = jnp.sum(a * a, axis=-1, keepdims=True)        # (TB, 1)
        nb2 = jnp.sum(b * b, axis=-1, keepdims=True)        # (TB, 1)

        eps = jnp.float32(1e-8)
        # torch.cosine_similarity clamps the squared-norm product at eps^2
        # before the sqrt; rsqrt keeps this to one EUP push per row.
        inv_denom = lax.rsqrt(jnp.maximum(na2 * nb2, eps * eps))
        cos = dot_ab * inv_denom                            # (TB, 1)

        diff = cos - lab
        # Zero-padded tail rows give cos == 0 and label == 0 -> contribute 0.
        sse_ref[0, 0] += jnp.sum(diff * diff)

        @pl.when(i == pl.num_programs(0) - 1)
        def _():
            # nn.MSELoss default 'mean' over the TRUE batch size.
            loss_ref[0, 0] = sse_ref[0, 0] * jnp.float32(inv_batch)

    return kernel


# ----------------------------------------------------------------------------
# One-time weight prep (mean-pool folded into the matmul K dimension)
# ----------------------------------------------------------------------------
def build_pooling_weights(w, seq_len):
    """(H, D) encoder weights -> (S*H, D) bf16 with the 1/S mean folded in.

    Depends only on the encoder weights; build once, reuse across calls.
    """
    return (jnp.tile(w, (seq_len, 1)) / jnp.float32(seq_len)).astype(jnp.bfloat16)


# ----------------------------------------------------------------------------
# Full forward: CosineSimilarityLoss(input_features=[feat_a, feat_b], labels)
# ----------------------------------------------------------------------------
def cosine_similarity_loss(input_features, labels, w_k, *, tile_b=256):
    tokens_a, tokens_b = input_features                     # each (B, S, H)
    B, S, H = tokens_a.shape
    SH, D = w_k.shape
    assert SH == S * H

    # M-tile: multiple of 16 (bf16 sublane packing); 256 for v6e/v7x production.
    TB = min(tile_b, _round_up(B, 16))
    assert TB % 16 == 0
    B_pad = _round_up(B, TB)

    # Reshape of a contiguous array is free; bf16 halves kernel HBM bytes.
    x_a = tokens_a.reshape(B, SH).astype(jnp.bfloat16)      # (B, S*H)
    x_b = tokens_b.reshape(B, SH).astype(jnp.bfloat16)      # (B, S*H)
    lab = labels.reshape(B, 1).astype(jnp.float32)          # (B, 1)
    if B_pad != B:
        pad = B_pad - B
        x_a = jnp.pad(x_a, ((0, pad), (0, 0)))
        x_b = jnp.pad(x_b, ((0, pad), (0, 0)))
        lab = jnp.pad(lab, ((0, pad), (0, 0)))

    grid = (B_pad // TB,)
    loss = pl.pallas_call(
        _make_kernel(true_batch=B),
        out_shape=jax.ShapeDtypeStruct((1, 1), jnp.float32),
        grid=grid,
        in_specs=[
            pl.BlockSpec((TB, SH), lambda i: (i, 0)),       # tokens_a tile
            pl.BlockSpec((TB, SH), lambda i: (i, 0)),       # tokens_b tile
            pl.BlockSpec((SH, D), lambda i: (0, 0)),        # W_k resident
            pl.BlockSpec((TB, 1), lambda i: (i, 0)),        # labels tile
        ],
        # Scalar loss through SMEM: no lane-sparse masked vst / output DMA per step.
        out_specs=pl.BlockSpec(memory_space=pltpu.MemorySpace.SMEM),
        scratch_shapes=[pltpu.SMEM((1, 1), jnp.float32)],
        compiler_params=pltpu.CompilerParams(
            # Serial SSE accumulation across M tiles (P3 init/finalize).
            dimension_semantics=("arbitrary",),
        ),
    )(x_a, x_b, w_k, lab)
    return loss[0, 0]


if __name__ == "__main__":
    B, S, H, D = 32, 8, 32, 128

    key = jax.random.PRNGKey(0)
    k1, k2, k3, k4 = jax.random.split(key, 4)
    tokens_a = jax.random.normal(k1, (B, S, H), dtype=jnp.float32)
    tokens_b = jax.random.normal(k2, (B, S, H), dtype=jnp.float32)
    labels = jax.random.uniform(k3, (B,), dtype=jnp.float32)
    w = jax.random.normal(k4, (H, D), dtype=jnp.float32) * 0.05  # synthetic "weights"

    # Build the K-folded weights once, outside the hot path.
    w_k = build_pooling_weights(w, S)

    # tile_b=16 so the toy problem actually exercises a multi-step grid (2 tiles).
    loss_fn = jax.jit(functools.partial(cosine_similarity_loss, tile_b=16))
    loss = loss_fn([tokens_a, tokens_b], labels, w_k)
    loss = jax.block_until_ready(loss)

    # ---- References ---------------------------------------------------------
    def cos_mse(ra, rb):
        eps = 1e-8
        dot = jnp.sum(ra * rb, axis=-1)
        na2 = jnp.sum(ra * ra, axis=-1)
        nb2 = jnp.sum(rb * rb, axis=-1)
        cos = dot / jnp.sqrt(jnp.maximum(na2 * nb2, eps * eps))
        return jnp.mean((cos - labels) ** 2)

    # Tight reference: same bf16-quantized operands, f32 accumulation (matches
    # the kernel's MXU path up to summation order).
    xa_q = tokens_a.reshape(B, S * H).astype(jnp.bfloat16).astype(jnp.float32)
    xb_q = tokens_b.reshape(B, S * H).astype(jnp.bfloat16).astype(jnp.float32)
    wk_q = w_k.astype(jnp.float32)
    hi = jax.lax.Precision.HIGHEST
    ref_tight = cos_mse(jnp.dot(xa_q, wk_q, precision=hi),
                        jnp.dot(xb_q, wk_q, precision=hi))

    # Semantic reference: original f32 mean-pool -> matmul (loose tolerance,
    # since the kernel feeds the MXU bf16).
    ref_f32 = cos_mse(jnp.dot(jnp.mean(tokens_a, axis=1), w, precision=hi),
                      jnp.dot(jnp.mean(tokens_b, axis=1), w, precision=hi))

    ref_tight, ref_f32 = jax.block_until_ready((ref_tight, ref_f32))
    assert jnp.allclose(loss, ref_tight, atol=1e-4, rtol=1e-4), (loss, ref_tight)
    assert jnp.allclose(loss, ref_f32, atol=2e-2, rtol=2e-2), (loss, ref_f32)

    print("KERNEL_OK")
</pallas_src>

<mosaic_0001>
module attributes {stable_mosaic.version = 11 : i64} {
  func.func @kernel(%arg0: i32, %arg1: memref<16x256xbf16, #tpu.memory_space<vmem>>, %arg2: memref<16x256xbf16, #tpu.memory_space<vmem>>, %arg3: memref<256x128xbf16, #tpu.memory_space<vmem>>, %arg4: memref<16x1xf32, #tpu.memory_space<vmem>>, %arg5: memref<1x1xf32, #tpu.memory_space<smem>>, %arg6: memref<1x1xf32, #tpu.memory_space<smem>>) attributes {dimension_semantics = [#tpu.dimension_semantics<arbitrary>], iteration_bounds = array<i64: 2>, scalar_prefetch = 0 : i64, scratch_operands = 1 : i64, tpu.core_type = #tpu.core_type<tc>, window_params = [{transform_indices = @transform_0, window_bounds = array<i64: 16, 256>}, {transform_indices = @transform_1, window_bounds = array<i64: 16, 256>}, {pipeline_mode = #tpu.pipeline_mode<synchronous>, transform_indices = @transform_2, window_bounds = array<i64: 256, 128>}, {transform_indices = @transform_3, window_bounds = array<i64: 16, 1>}, {transform_indices = @transform_4, window_bounds = array<i64: 1, 1>}]} {
    %c0_i32 = arith.constant 0 : i32
    %0 = arith.cmpi eq, %arg0, %c0_i32 : i32
    %1 = arith.extui %0 : i1 to i32
    %c0_i32_0 = arith.constant 0 : i32
    %2 = arith.cmpi ne, %1, %c0_i32_0 : i32
    scf.if %2 {
      %cst_20 = arith.constant 0.000000e+00 : f32
      %c0_21 = arith.constant 0 : index
      %c0_22 = arith.constant 0 : index
      %36 = memref.load %arg6[%c0_21, %c0_22] : memref<1x1xf32, #tpu.memory_space<smem>>
      memref.store %cst_20, %arg6[%c0_21, %c0_22] : memref<1x1xf32, #tpu.memory_space<smem>>
    } else {
    }
    %c0 = arith.constant 0 : index
    %c0_1 = arith.constant 0 : index
    %3 = vector.load %arg3[%c0, %c0_1] : memref<256x128xbf16, #tpu.memory_space<vmem>>, vector<256x128xbf16>
    %c0_2 = arith.constant 0 : index
    %c0_3 = arith.constant 0 : index
    %4 = vector.load %arg1[%c0_2, %c0_3] : memref<16x256xbf16, #tpu.memory_space<vmem>>, vector<16x256xbf16>
    %cst = arith.constant dense<0.000000e+00> : vector<16x128xf32>
    %5 = tpu.matmul %4, %3, %cst {dimension_numbers = #tpu.dot_dimension_numbers<[1], [0], [0], [1], [0, 0, 1, 1], [], []>} : vector<16x256xbf16>, vector<256x128xbf16>, vector<16x128xf32> -> vector<16x128xf32>
    %c0_4 = arith.constant 0 : index
    %c0_5 = arith.constant 0 : index
    %6 = vector.load %arg2[%c0_4, %c0_5] : memref<16x256xbf16, #tpu.memory_space<vmem>>, vector<16x256xbf16>
    %cst_6 = arith.constant dense<0.000000e+00> : vector<16x128xf32>
    %7 = tpu.matmul %6, %3, %cst_6 {dimension_numbers = #tpu.dot_dimension_numbers<[1], [0], [0], [1], [0, 0, 1, 1], [], []>} : vector<16x256xbf16>, vector<256x128xbf16>, vector<16x128xf32> -> vector<16x128xf32>
    %c0_7 = arith.constant 0 : index
    %c0_8 = arith.constant 0 : index
    %8 = vector.load %arg4[%c0_7, %c0_8] : memref<16x1xf32, #tpu.memory_space<vmem>>, vector<16x1xf32>
    %9 = arith.mulf %5, %7 : vector<16x128xf32>
    %cst_9 = arith.constant dense<0.000000e+00> : vector<16xf32>
    %10 = vector.multi_reduction <add>, %9, %cst_9 [1] : vector<16x128xf32> to vector<16xf32>
    %11 = vector.shape_cast %10 : vector<16xf32> to vector<16x1xf32>
    %12 = arith.mulf %5, %5 : vector<16x128xf32>
    %cst_10 = arith.constant dense<0.000000e+00> : vector<16xf32>
    %13 = vector.multi_reduction <add>, %12, %cst_10 [1] : vector<16x128xf32> to vector<16xf32>
    %14 = vector.shape_cast %13 : vector<16xf32> to vector<16x1xf32>
    %15 = arith.mulf %7, %7 : vector<16x128xf32>
    %cst_11 = arith.constant dense<0.000000e+00> : vector<16xf32>
    %16 = vector.multi_reduction <add>, %15, %cst_11 [1] : vector<16x128xf32> to vector<16xf32>
    %17 = vector.shape_cast %16 : vector<16xf32> to vector<16x1xf32>
    %18 = arith.mulf %14, %17 : vector<16x1xf32>
    %cst_12 = arith.constant 9.99999993E-9 : f32
    %cst_13 = arith.constant 9.99999993E-9 : f32
    %19 = arith.mulf %cst_12, %cst_13 : f32
    %20 = vector.broadcast %19 : f32 to vector<16x1xf32>
    %21 = arith.maximumf %18, %20 : vector<16x1xf32>
    %22 = math.rsqrt %21 : vector<16x1xf32>
    %23 = arith.mulf %11, %22 : vector<16x1xf32>
    %24 = arith.subf %23, %8 : vector<16x1xf32>
    %c0_14 = arith.constant 0 : index
    %c0_15 = arith.constant 0 : index
    %25 = memref.load %arg6[%c0_14, %c0_15] : memref<1x1xf32, #tpu.memory_space<smem>>
    %26 = arith.mulf %24, %24 : vector<16x1xf32>
    %27 = vector.shape_cast %26 : vector<16x1xf32> to vector<1x16x1xf32>
    %cst_16 = arith.constant dense<0.000000e+00> : vector<1xf32>
    %28 = vector.multi_reduction <add>, %27, %cst_16 [1, 2] : vector<1x16x1xf32> to vector<1xf32>
    %29 = vector.shape_cast %28 : vector<1xf32> to vector<1x1x1xf32>
    %30 = vector.extract %29[0, 0, 0] : f32 from vector<1x1x1xf32>
    %31 = arith.addf %25, %30 : f32
    %c0_17 = arith.constant 0 : index
    %c0_18 = arith.constant 0 : index
    %32 = memref.load %arg6[%c0_17, %c0_18] : memref<1x1xf32, #tpu.memory_space<smem>>
    memref.store %31, %arg6[%c0_17, %c0_18] : memref<1x1xf32, #tpu.memory_space<smem>>
    %c1_i32 = arith.constant 1 : i32
    %33 = arith.cmpi eq, %arg0, %c1_i32 : i32
    %34 = arith.extui %33 : i1 to i32
    %c0_i32_19 = arith.constant 0 : i32
    %35 = arith.cmpi ne, %34, %c0_i32_19 : i32
    scf.if %35 {
      %c0_20 = arith.constant 0 : index
      %c0_21 = arith.constant 0 : index
      %36 = memref.load %arg6[%c0_20, %c0_21] : memref<1x1xf32, #tpu.memory_space<smem>>
      %cst_22 = arith.constant 3.125000e-02 : f32
      %37 = arith.mulf %36, %cst_22 : f32
      %c0_23 = arith.constant 0 : index
      %c0_24 = arith.constant 0 : index
      %38 = memref.load %arg5[%c0_23, %c0_24] : memref<1x1xf32, #tpu.memory_space<smem>>
      memref.store %37, %arg5[%c0_23, %c0_24] : memref<1x1xf32, #tpu.memory_space<smem>>
    } else {
    }
    return
  }
  func.func @transform_0(%arg0: i32) -> (i32, i32) {
    %c0_i32 = arith.constant 0 : i32
    %c0_i32_0 = arith.constant 0 : i32
    return %arg0, %c0_i32 : i32, i32
  }
  func.func @transform_1(%arg0: i32) -> (i32, i32) {
    %c0_i32 = arith.constant 0 : i32
    %c0_i32_0 = arith.constant 0 : i32
    return %arg0, %c0_i32 : i32, i32
  }
  func.func @transform_2(%arg0: i32) -> (i32, i32) {
    %c0_i32 = arith.constant 0 : i32
    %c0_i32_0 = arith.constant 0 : i32
    %c0_i32_1 = arith.constant 0 : i32
    return %c0_i32, %c0_i32_0 : i32, i32
  }
  func.func @transform_3(%arg0: i32) -> (i32, i32) {
    %c0_i32 = arith.constant 0 : i32
    %c0_i32_0 = arith.constant 0 : i32
    return %arg0, %c0_i32 : i32, i32
  }
  func.func @transform_4(%arg0: i32) -> (i32, i32) {
    %c0_i32 = arith.constant 0 : i32
    %c0_i32_0 = arith.constant 0 : i32
    %c0_i32_1 = arith.constant 0 : i32
    return %c0_i32, %c0_i32_0 : i32, i32
  }
}

</mosaic_0001>

<bundles_post_ra>
// kernel: cosine_similarity_loss.1
= control target key start
LH: loop header
LB: loop body
LE: loop exit
PB: predicated region body
PF: predicated region fallthrough
CT: control target
= control target key end

     0   :  { %9 = vsyncpa [#allocation4], 0  ;;  %s786_s15 = smov 0   ;;  %s867_s0 = inlined_call_operand.vmem [shape: bf16[32,256], index: 0, kind: input, shape index: {}]   ;;  %s868_s1 = inlined_call_operand.vmem [shape: bf16[32,256], index: 1, kind: input, shape index: {}]   ;;  %s869_s2 = inlined_call_operand.vmem [shape: bf16[256,128], index: 2, kind: input, shape index: {}]   ;;  %s870_s3 = inlined_call_operand.vmem [shape: f32[32,1], index: 3, kind: input, shape index: {}]   ;;  %s871_s4 = inlined_call_operand.hbm [shape: f32[1,1], index: 4, kind: output, shape index: {}]  }
   0x1 LB: > { %s792_s16 = sadd.s32 4294967295, %s757_s15   ;;  %p606_p0 = scmp.ge.s32.totalorder %s757_s15, 1  ;;  %s757_s15 = sphi %s786_s15, %s15_s15  }
   0x2   : > { %p183_p1 = scmp.lt.s32.totalorder %s757_s15, 3 }
   0x4   : > { %p184_p2 = pnand %p606_p0, %p183_p1 }
   0x5   : > { %s607_s21 = sshll.u32 (!%p184_p2), %s792_s16, 1  ;;  %p697_p4 = scmp.eq.s32.totalorder (!%p184_p2), %s792_s16, 0 }
   0x6   : > { %187 = sbr.rel (%p184_p2) target bundleno = 621 (0x26d), region = 36  ;;  %p217_p3 = scmp.lt.s32.totalorder (!%p184_p2), %s607_s21, 3 }
   0x7   : > { %p698_p5 = scmp.eq.s32.totalorder (!%p184_p2), %s792_s16, 1  ;;  %s760_s17 = smov (!%p184_p2), [#allocation3]  }
   0xb   : > { %v711_v0 = vld [vmem:[%s869_s2 + $0x78] sm:$0xff]   ;;  %v713_v2 = vld [vmem:[%s869_s2 + $0x70] sm:$0xff]   ;;  %v715_v4 = vld [vmem:[%s869_s2 + $0x68] sm:$0xff]   ;;  %s873_s21 = smov (!%p217_p3, %s607_s21), 3  ;;  %vm510_vm0 = vcmask 7168  }
   0xc   : > { %v712_v1 = vld [vmem:[%s869_s2 + $0x38] sm:$0xff]   ;;  %643 = vmatprep.subr.bf16.mxu0 %v711_v0  ;;  %665 = vmatprep.subr.bf16.mxu1 %v711_v0  ;;  %v714_v3 = vld [vmem:[%s869_s2 + $0x30] sm:$0xff]   ;;  %v716_v5 = vld [vmem:[%s869_s2 + $0x28] sm:$0xff]   ;;  %s821_s8 = sshll.u32 %s873_s21, 3 }
   0xd   : > { %644 = vmatpush3.bf16.msra.mxu0 %v712_v1  ;;  %666 = vmatpush3.bf16.msra.mxu1 %v712_v1  ;;  %v717_v6 = vld [vmem:[%s869_s2 + $0x60] sm:$0xff]   ;;  %v719_v8 = vld [vmem:[%s869_s2 + $0x58] sm:$0xff]   ;;  %s221_s13 = scalar_lea.vmem %s867_s0, %s821_s8  ;;  %s228_s20 = scalar_lea.vmem %s868_s1, %s821_s8  ;;  %v721_v10 = vld [vmem:[%s869_s2 + $0x50] sm:$0xff]  }
   0xe   : > { %645 = vmatprep.subr.bf16.mxu0 %v713_v2  ;;  %667 = vmatprep.subr.bf16.mxu1 %v713_v2  ;;  %v718_v7 = vld [vmem:[%s869_s2 + $0x20] sm:$0xff]   ;;  %v720_v9 = vld [vmem:[%s869_s2 + $0x18] sm:$0xff]   ;;  %v722_v13 = vld [vmem:[%s869_s2 + $0x10] sm:$0xff]   ;;  %s234_s10 = scalar_lea.vmem %s870_s3, %s821_s8  ;;  %s759_s8 = smov 0.0  }
   0xf   : > { %v729_v11 = vld [vmem:[%s221_s13 + $0x4] ss:$8 sps:$4 sm:$0xff]   ;;  %v727_v18 = vld [vmem:[%s221_s13] ss:$8 sps:$4 sm:$0xff]   ;;  %690 = sst [smem:[#allocation2]] (%p697_p4), %s759_s8 }
  0x10   : > { %v732_v12 = vld [vmem:[%s228_s20 + $0x4] ss:$8 sps:$4 sm:$0xff]   ;;  %415 = vmatprep.mubr.bf16.mxu0 %v729_v11  ;;  %v730_v19 = vld [vmem:[%s228_s20] ss:$8 sps:$4 sm:$0xff]   ;;  %s507_s11 = sld [smem:[#allocation2]] }
  0x11   : > { %646 = vmatpush3.bf16.msra.mxu0 %v714_v3  ;;  %668 = vmatpush3.bf16.msra.mxu1 %v714_v3  ;;  %v723_v14 = vld [vmem:[%s869_s2 + $0x48] sm:$0xff]   ;;  %v725_v16 = vld [vmem:[%s869_s2 + $0x40] sm:$0xff]  }
  0x12   : > { %647 = vmatprep.subr.bf16.mxu0 %v715_v4  ;;  %669 = vmatprep.subr.bf16.mxu1 %v715_v4  ;;  %v724_v15 = vld [vmem:[%s869_s2 + $0x8] sm:$0xff]   ;;  %v726_v17 = vld [vmem:[%s869_s2] sm:$0xff]  }
  0x13   : > { %468 = vmatprep.mubr.bf16.mxu1 %v732_v12  ;;  %v477_v47 = vld [vmem:[%s234_s10] sm:$0xff]  ;;  %v478_v52 = vld [vmem:[%s234_s10 + $0x8] sm:$0xff] }
  0x15   : > { %648 = vmatpush3.bf16.msra.mxu0 %v716_v5  ;;  %670 = vmatpush3.bf16.msra.mxu1 %v716_v5 }
  0x16   : > { %649 = vmatprep.subr.bf16.mxu0 %v717_v6  ;;  %671 = vmatprep.subr.bf16.mxu1 %v717_v6 }
  0x19   : > { %650 = vmatpush3.bf16.msra.mxu0 %v718_v7  ;;  %672 = vmatpush3.bf16.msra.mxu1 %v718_v7 }
  0x1a   : > { %651 = vmatprep.subr.bf16.mxu0 %v719_v8  ;;  %673 = vmatprep.subr.bf16.mxu1 %v719_v8 }
  0x1d   : > { %652 = vmatpush3.bf16.msra.mxu0 %v720_v9  ;;  %674 = vmatpush3.bf16.msra.mxu1 %v720_v9 }
  0x1e   : > { %653 = vmatprep.subr.bf16.mxu0 %v721_v10  ;;  %675 = vmatprep.subr.bf16.mxu1 %v721_v10 }
  0x21   : > { %654 = vmatpush3.bf16.msra.mxu0 %v722_v13  ;;  %676 = vmatpush3.bf16.msra.mxu1 %v722_v13 }
  0x22   : > { %655 = vmatprep.subr.bf16.mxu0 %v723_v14  ;;  %677 = vmatprep.subr.bf16.mxu1 %v723_v14 }
  0x25   : > { %656 = vmatpush3.bf16.msra.mxu0 %v724_v15  ;;  %678 = vmatpush3.bf16.msra.mxu1 %v724_v15 }
  0x26   : > { %657 = vmatprep.subr.bf16.mxu0 %v725_v16  ;;  %679 = vmatprep.subr.bf16.mxu1 %v725_v16 }
  0x29   : > { %658 = vmatpush3.bf16.msra.mxu0 %v726_v17  ;;  %680 = vmatpush3.bf16.msra.mxu1 %v726_v17 }
  0x2c   : > { %416 = vmatmul.mubr.bf16.vlgmr.msra.gmra.mxu0 %v727_v18  ;;  %469 = vmatmul.mubr.bf16.vlgmr.msra.gmra.mxu1 %v730_v19 }
  0xec   : > { %v659_v20 = vpop.f32.mrf.mxu0  ;;  %v681_v21 = vpop.f32.mrf.mxu1 }
  0xee   : > { %v660_v22 = vpop.f32.mrf.mxu0  ;;  %v682_v23 = vpop.f32.mrf.mxu1 }
  0xef   : > { %v661_v24 = vadd.f32 %v660_v22, %v659_v20  ;;  %v683_v25 = vadd.f32 %v682_v23, %v681_v21 }
  0xf0   : > { %v662_v26 = vpop.f32.mrf.mxu0  ;;  %v684_v27 = vpop.f32.mrf.mxu1 }
  0xf1   : > { %v491_v28 = vmul.f32 %v683_v25, %v683_v25  ;;  %v485_v29 = vmul.f32 %v661_v24, %v661_v24  ;;  %v479_v37 = vmul.f32 %v683_v25, %v661_v24 }
  0xf2   : > { %v663_v30 = vpop.f32.mrf.mxu0  ;;  %v685_v31 = vpop.f32.mrf.mxu1 }
  0xf3   : > { %v664_v32 = vadd.f32 %v663_v30, %v662_v26  ;;  %v686_v33 = vadd.f32 %v685_v31, %v684_v27  ;;  %493 = vadd.xlane.f32.xlu1 %v491_v28  ;;  %487 = vadd.xlane.f32.xlu0 %v485_v29 }
  0xf5   : > { %v492_v34 = vmul.f32 %v686_v33, %v686_v33  ;;  %v486_v35 = vmul.f32 %v664_v32, %v664_v32  ;;  %v480_v36 = vmul.f32 %v686_v33, %v664_v32 }
  0xf7   : > { %495 = vadd.xlane.f32.xlu1 %v492_v34  ;;  %489 = vadd.xlane.f32.xlu0 %v486_v35 }
  0xfb   : > { %483 = vadd.xlane.f32.xlu1 %v480_v36  ;;  %481 = vadd.xlane.f32.xlu0 %v479_v37 }
 0x17c   : > { %v494_v38 = vpop.xlane.xlu1 %493  ;;  %v488_v39 = vpop.xlane.xlu0 %487 }
 0x17d   : > { %v497_v40 = vmul.f32 %v494_v38, %v488_v39 }
 0x17f   : > { %v499_v41 = vmax.f32 %v497_v40, 1e-16 }
 0x180   : > { %v496_v42 = vpop.xlane.xlu1 %495  ;;  %v490_v43 = vpop.xlane.xlu0 %489 }
 0x181   : > { %733 = vrsqrt.f32 %v499_v41  ;;  %v498_v44 = vmul.f32 %v496_v42, %v490_v43 }
 0x183   : > { %v500_v45 = vmax.f32 %v498_v44, 1e-16 }
 0x184   : > { %v482_v48 = vpop.xlane.xlu0 %481  ;;  %v484_v53 = vpop.xlane.xlu1 %483 }
 0x185   : > { %735 = vrsqrt.f32 %v500_v45 }
 0x18e   : > { %v734_v46 = vpop.eup %733 }
 0x18f   : > { %v503_v49 = vmul.f32 %v734_v46, %v482_v48 }
 0x191   : > { %v505_v50 = vsub.f32 %v503_v49, %v477_v47 }
 0x192   : > { %v736_v51 = vpop.eup %735 }
 0x193   : > { %v504_v54 = vmul.f32 %v736_v51, %v484_v53  ;;  %v508_v56 = vmul.f32 %v505_v50, %v505_v50 }
 0x195   : > { %v506_v55 = vsub.f32 %v504_v54, %v478_v52  ;;  %v511_v58 = vsel %vm510_vm0, %v508_v56, 0.0 }
 0x197   : > { %v509_v57 = vmul.f32 %v506_v55, %v506_v55 }
 0x199   : > { %v512_v59 = vsel %vm510_vm0, %v509_v57, 0.0 }
 0x19a   : > { %v513_v60 = vadd.f32 %v512_v59, %v511_v58 }
 0x19c   : > { %514 = vadd.xlane.f32.xlu0 %v513_v60 }
 0x225   : > { %v515_v61 = vpop.xlane.xlu0 %514 }
 0x226   : > { %v516_v62 = vrot.slane %v515_v61, 4 }
 0x228   : > { %v517_v63 = vadd.f32 %v516_v62, %v515_v61 }
 0x22a   : > { %v518_v0 = vrot.slane %v517_v63, 2 }
 0x22c   : > { %v519_v1 = vadd.f32 %v518_v0, %v517_v63 }
 0x22e   : > { %v520_v2 = vrot.slane %v519_v1, 1 }
 0x230   : > { %v521_v3 = vadd.f32 %v520_v2, %v519_v1 }
 0x232   : > { %687 = vpush %v521_v3 }
 0x263   : > { %s688_s12 = spop %687 }
 0x264   : > { %s523_s13 = sadd.f32 %s688_s12, %s507_s11 }
 0x266   : > { %525 = sst [smem:[#allocation2]] %s523_s13  ;;  %s531_s14 = smul.f32 0.03125, %s523_s13 }
 0x268   : > { %692 = sst [smem:[#allocation3]] (%p698_p5), %s531_s14 }
 0x269   : > { %694 = dma.smem_to_hbm (%p698_p5), %s760_s17, 16, %s871_s4, [#allocation4]  }
 0x26a   : > { %752 = dma.done.wait (%p698_p5), [#allocation4], 16  }
 0x26b   : > { %754 = vsyncadd (%p698_p5), [#allocation4], 4294967280 }
 0x26c   : > { %547 = sfence }
 0x26d PF: > { %s15_s15 = sadd.s32 1, %s757_s15  }
 0x26e   : > { %p12_p6 = scmp.ge.s32.totalorder %s15_s15, 4  }
 0x270   :  { %14 = sbr.rel (!%p12_p6) target bundleno = 1 (0x1), region = 80 }
 0x275   :  { %553 = vsyncpa [#allocation4], 1 }
 0x276   :  { %555 = vsyncpa [#allocation4 + $0x1], 1 }

</bundles_post_ra>
